<compile_context>
chip_gen: v7x
topology: tpu7x:2x2x1
jax: 0.10.0
libtpu: 0.0.40
codegen_flags: <defaults>
</compile_context>

<pallas_src>
import functools

import jax
import jax.numpy as jnp
from jax.experimental import pallas as pl
from jax.experimental.pallas import tpu as pltpu

LANE = 128      # vreg lane width
SUBLANE = 8     # f32 sublanes per vreg (bf16 packs 16)


def _round_up(n, m):
    return (n + m - 1) // m * m


def _pad_to(a, shape):
    return jnp.pad(a, [(0, s - d) for s, d in zip(shape, a.shape)])


def _actor_kernel(x_ref, w1_ref, b1_ref, w2_ref, b2_ref, w3_ref, b3_ref,
                  w4_ref, b4_ref, out_ref, *, max_action):
    # Weights are f32 or bf16; MXU accumulates in f32 either way.
    dot_dtype = w1_ref.dtype

    x = x_ref[...].astype(dot_dtype)
    h = jnp.dot(x, w1_ref[...], preferred_element_type=jnp.float32)
    h = jnp.maximum(h + b1_ref[...], 0.0)

    h = jnp.dot(h.astype(dot_dtype), w2_ref[...],
                preferred_element_type=jnp.float32)
    h = jnp.maximum(h + b2_ref[...], 0.0)

    h = jnp.dot(h.astype(dot_dtype), w3_ref[...],
                preferred_element_type=jnp.float32)
    h = jnp.maximum(h + b3_ref[...], 0.0)

    a = jnp.dot(h.astype(dot_dtype), w4_ref[...],
                preferred_element_type=jnp.float32) + b4_ref[...]
    a = jnp.tanh(a)                      # EUP slot, off the MXU/VPU paths
    if max_action != 1.0:                # static Python check: skip the mul
        a = max_action * a
    out_ref[...] = a.astype(out_ref.dtype)


def prepare_params(params, compute_dtype=jnp.bfloat16):
    """One-time padding + dtype cast of the weights/biases.

    Only the hidden dim is padded (to 128 lanes) — it never touches HBM as an
    activation.  obs_dim / act_dim stay unpadded so the kernel's HBM streams
    (x in, actions out) carry no padding bytes.
    """
    obs_dim, hidden = params["w1"].shape
    act_dim = params["w4"].shape[1]
    hid_p = _round_up(hidden, LANE)
    cdt = compute_dtype
    return {
        "w1": _pad_to(params["w1"], (obs_dim, hid_p)).astype(cdt),
        "b1": _pad_to(params["b1"], (1, hid_p)).astype(jnp.float32),
        "w2": _pad_to(params["w2"], (hid_p, hid_p)).astype(cdt),
        "b2": _pad_to(params["b2"], (1, hid_p)).astype(jnp.float32),
        "w3": _pad_to(params["w3"], (hid_p, hid_p)).astype(cdt),
        "b3": _pad_to(params["b3"], (1, hid_p)).astype(jnp.float32),
        "w4": _pad_to(params["w4"], (hid_p, act_dim)).astype(cdt),
        "b4": params["b4"].astype(jnp.float32),
    }


def actor_forward(x, prepared, max_action, *, block_b=2048):
    """x: [B, obs_dim] float32.  prepared: output of prepare_params().

    Returns [B, act_dim] float32.
    """
    B, obs_dim = x.shape
    assert prepared["w1"].shape[0] == obs_dim, "obs_dim mismatch with params"
    act_dim = prepared["w4"].shape[1]
    cdt = prepared["w1"].dtype

    # Batch tiling: align to the sublane packing of the compute dtype
    # (16 rows for bf16, 8 for f32), and ensure the grid has >= 2 steps when
    # the batch allows it so v7x can shard the "parallel" axis across its 2 TCs.
    align = 16 if cdt == jnp.bfloat16 else SUBLANE
    block_b = max(align, _round_up(block_b, align))
    B_a = _round_up(B, align)
    bb = min(block_b, B_a)
    if B_a >= 2 * align:
        bb = min(bb, _round_up(pl.cdiv(B_a, 2), align))
    B_p = _round_up(B, bb)
    grid = (B_p // bb,)

    # Cast the input stream to the MXU dtype (halves HBM bytes for bf16) and
    # pad only the batch rows needed to fill the last tile.
    x_c = x if x.dtype == cdt else x.astype(cdt)
    if B_p != B:
        x_c = jnp.pad(x_c, ((0, B_p - B), (0, 0)))

    kernel = functools.partial(_actor_kernel, max_action=float(max_action))

    # Weights/biases: constant block index -> fetched once, VMEM-resident
    # across all batch tiles.
    def resident(arr):
        return pl.BlockSpec(arr.shape, lambda i: (0, 0))

    w1, b1 = prepared["w1"], prepared["b1"]
    w2, b2 = prepared["w2"], prepared["b2"]
    w3, b3 = prepared["w3"], prepared["b3"]
    w4, b4 = prepared["w4"], prepared["b4"]

    out = pl.pallas_call(
        kernel,
        out_shape=jax.ShapeDtypeStruct((B_p, act_dim), jnp.float32),
        grid_spec=pltpu.PrefetchScalarGridSpec(
            num_scalar_prefetch=0,
            grid=grid,
            in_specs=[pl.BlockSpec((bb, obs_dim), lambda i: (i, 0)),
                      resident(w1), resident(b1),
                      resident(w2), resident(b2),
                      resident(w3), resident(b3),
                      resident(w4), resident(b4)],
            out_specs=pl.BlockSpec((bb, act_dim), lambda i: (i, 0)),
        ),
        compiler_params=pltpu.CompilerParams(
            dimension_semantics=("parallel",)),
    )(x_c, w1, b1, w2, b2, w3, b3, w4, b4)

    return out if B_p == B else out[:B]


def init_params(key, obs_dim, act_dim, hidden=64):
    """Deterministic synthetic init (PyTorch-Linear-like uniform fan-in bound)."""
    ks = jax.random.split(key, 8)

    def linear(kw, kb, fan_in, fan_out):
        bound = 1.0 / jnp.sqrt(fan_in)
        w = jax.random.uniform(kw, (fan_in, fan_out), jnp.float32, -bound, bound)
        b = jax.random.uniform(kb, (1, fan_out), jnp.float32, -bound, bound)
        return w, b

    w1, b1 = linear(ks[0], ks[1], obs_dim, hidden)
    w2, b2 = linear(ks[2], ks[3], hidden, hidden)
    w3, b3 = linear(ks[4], ks[5], hidden, hidden)
    w4, b4 = linear(ks[6], ks[7], hidden, act_dim)
    return {"w1": w1, "b1": b1, "w2": w2, "b2": b2,
            "w3": w3, "b3": b3, "w4": w4, "b4": b4}


def actor_ref(x, p, max_action, compute_dtype=jnp.float32):
    """Pure-JAX reference with the same dtype semantics as the kernel."""
    def dense(h, w, b):
        return jnp.dot(h.astype(compute_dtype), w.astype(compute_dtype),
                       preferred_element_type=jnp.float32) + b

    h = jax.nn.relu(dense(x, p["w1"], p["b1"]))
    h = jax.nn.relu(dense(h, p["w2"], p["b2"]))
    h = jax.nn.relu(dense(h, p["w3"], p["b3"]))
    return max_action * jnp.tanh(dense(h, p["w4"], p["b4"]))


if __name__ == "__main__":
    key = jax.random.PRNGKey(0)
    k_x, k_p, k_x2 = jax.random.split(key, 3)

    batch = 2
    obs_dim = 16      # args.obs_shape[agent_id]
    act_dim = 8       # args.action_shape[agent_id]
    max_action = 1.0  # args.high_action

    x = jax.random.normal(k_x, (batch, obs_dim), jnp.float32)
    params = init_params(k_p, obs_dim, act_dim)
    ref_f32 = actor_ref(x, params, max_action)

    # 1) Default bf16 MXU path (f32 accumulation), tiny batch -> single step.
    prep_bf16 = prepare_params(params, compute_dtype=jnp.bfloat16)
    out = jax.block_until_ready(actor_forward(x, prep_bf16, max_action))
    ref_bf16 = actor_ref(x, params, max_action, compute_dtype=jnp.bfloat16)
    assert out.shape == (batch, act_dim)
    assert jnp.allclose(out, ref_bf16, atol=1e-3, rtol=1e-3), "bf16 mismatch vs matched ref"
    assert jnp.allclose(out, ref_f32, atol=5e-2, rtol=5e-2), "bf16 drift vs f32 ref"

    # 2) Multi-tile grid + batch-row padding (B=50, 32-row tiles -> 2 steps),
    #    with a non-trivial max_action to exercise the scale path.
    x2 = jax.random.normal(k_x2, (50, obs_dim), jnp.float32)
    out2 = jax.block_until_ready(
        actor_forward(x2, prep_bf16, 2.0, block_b=32))
    ref2 = actor_ref(x2, params, 2.0, compute_dtype=jnp.bfloat16)
    assert out2.shape == (50, act_dim)
    assert jnp.allclose(out2, ref2, atol=2e-3, rtol=2e-3), "grid-tiled mismatch"

    # 3) Large default batch tile (block_b=2048) with ragged B.
    out2b = jax.block_until_ready(actor_forward(x2, prep_bf16, 2.0))
    assert jnp.allclose(out2b, ref2, atol=2e-3, rtol=2e-3), "default-tile mismatch"

    # 4) f32 MXU-input path (note: default jnp.dot precision on TPU is not
    #    bit-exact f32; the reference shares the same semantics).
    prep_f32 = prepare_params(params, compute_dtype=jnp.float32)
    out3 = jax.block_until_ready(actor_forward(x, prep_f32, max_action))
    assert jnp.allclose(out3, ref_f32, atol=1e-5, rtol=1e-5), "f32 mismatch vs reference"

    print("KERNEL_OK")
</pallas_src>

<mosaic_0001>
module attributes {stable_mosaic.version = 11 : i64} {
  func.func @_actor_kernel(%arg0: i32, %arg1: memref<16x16xbf16, #tpu.memory_space<vmem>>, %arg2: memref<16x128xbf16, #tpu.memory_space<vmem>>, %arg3: memref<1x128xf32, #tpu.memory_space<vmem>>, %arg4: memref<128x128xbf16, #tpu.memory_space<vmem>>, %arg5: memref<1x128xf32, #tpu.memory_space<vmem>>, %arg6: memref<128x128xbf16, #tpu.memory_space<vmem>>, %arg7: memref<1x128xf32, #tpu.memory_space<vmem>>, %arg8: memref<128x8xbf16, #tpu.memory_space<vmem>>, %arg9: memref<1x8xf32, #tpu.memory_space<vmem>>, %arg10: memref<16x8xf32, #tpu.memory_space<vmem>>) attributes {dimension_semantics = [#tpu.dimension_semantics<parallel>], iteration_bounds = array<i64: 1>, scalar_prefetch = 0 : i64, scratch_operands = 0 : i64, tpu.core_type = #tpu.core_type<tc>, window_params = [{transform_indices = @transform_0, window_bounds = array<i64: 16, 16>}, {pipeline_mode = #tpu.pipeline_mode<synchronous>, transform_indices = @transform_1, window_bounds = array<i64: 16, 128>}, {pipeline_mode = #tpu.pipeline_mode<synchronous>, transform_indices = @transform_2, window_bounds = array<i64: 1, 128>}, {pipeline_mode = #tpu.pipeline_mode<synchronous>, transform_indices = @transform_3, window_bounds = array<i64: 128, 128>}, {pipeline_mode = #tpu.pipeline_mode<synchronous>, transform_indices = @transform_4, window_bounds = array<i64: 1, 128>}, {pipeline_mode = #tpu.pipeline_mode<synchronous>, transform_indices = @transform_5, window_bounds = array<i64: 128, 128>}, {pipeline_mode = #tpu.pipeline_mode<synchronous>, transform_indices = @transform_6, window_bounds = array<i64: 1, 128>}, {pipeline_mode = #tpu.pipeline_mode<synchronous>, transform_indices = @transform_7, window_bounds = array<i64: 128, 8>}, {pipeline_mode = #tpu.pipeline_mode<synchronous>, transform_indices = @transform_8, window_bounds = array<i64: 1, 8>}, {transform_indices = @transform_9, window_bounds = array<i64: 16, 8>}]} {
    %c0 = arith.constant 0 : index
    %c0_0 = arith.constant 0 : index
    %0 = vector.load %arg1[%c0, %c0_0] : memref<16x16xbf16, #tpu.memory_space<vmem>>, vector<16x16xbf16>
    %c0_1 = arith.constant 0 : index
    %c0_2 = arith.constant 0 : index
    %1 = vector.load %arg2[%c0_1, %c0_2] : memref<16x128xbf16, #tpu.memory_space<vmem>>, vector<16x128xbf16>
    %cst = arith.constant dense<0.000000e+00> : vector<16x128xf32>
    %2 = tpu.matmul %0, %1, %cst {dimension_numbers = #tpu.dot_dimension_numbers<[1], [0], [0], [1], [0, 0, 1, 1], [], []>} : vector<16x16xbf16>, vector<16x128xbf16>, vector<16x128xf32> -> vector<16x128xf32>
    %c0_3 = arith.constant 0 : index
    %c0_4 = arith.constant 0 : index
    %3 = vector.load %arg3[%c0_3, %c0_4] : memref<1x128xf32, #tpu.memory_space<vmem>>, vector<1x128xf32>
    %4 = vector.broadcast %3 : vector<1x128xf32> to vector<16x128xf32>
    %5 = arith.addf %2, %4 : vector<16x128xf32>
    %cst_5 = arith.constant 0.000000e+00 : f32
    %6 = vector.broadcast %cst_5 : f32 to vector<16x128xf32>
    %7 = arith.maximumf %5, %6 : vector<16x128xf32>
    %8 = arith.truncf %7 : vector<16x128xf32> to vector<16x128xbf16>
    %c0_6 = arith.constant 0 : index
    %c0_7 = arith.constant 0 : index
    %9 = vector.load %arg4[%c0_6, %c0_7] : memref<128x128xbf16, #tpu.memory_space<vmem>>, vector<128x128xbf16>
    %cst_8 = arith.constant dense<0.000000e+00> : vector<16x128xf32>
    %10 = tpu.matmul %8, %9, %cst_8 {dimension_numbers = #tpu.dot_dimension_numbers<[1], [0], [0], [1], [0, 0, 1, 1], [], []>} : vector<16x128xbf16>, vector<128x128xbf16>, vector<16x128xf32> -> vector<16x128xf32>
    %c0_9 = arith.constant 0 : index
    %c0_10 = arith.constant 0 : index
    %11 = vector.load %arg5[%c0_9, %c0_10] : memref<1x128xf32, #tpu.memory_space<vmem>>, vector<1x128xf32>
    %12 = vector.broadcast %11 : vector<1x128xf32> to vector<16x128xf32>
    %13 = arith.addf %10, %12 : vector<16x128xf32>
    %cst_11 = arith.constant 0.000000e+00 : f32
    %14 = vector.broadcast %cst_11 : f32 to vector<16x128xf32>
    %15 = arith.maximumf %13, %14 : vector<16x128xf32>
    %16 = arith.truncf %15 : vector<16x128xf32> to vector<16x128xbf16>
    %c0_12 = arith.constant 0 : index
    %c0_13 = arith.constant 0 : index
    %17 = vector.load %arg6[%c0_12, %c0_13] : memref<128x128xbf16, #tpu.memory_space<vmem>>, vector<128x128xbf16>
    %cst_14 = arith.constant dense<0.000000e+00> : vector<16x128xf32>
    %18 = tpu.matmul %16, %17, %cst_14 {dimension_numbers = #tpu.dot_dimension_numbers<[1], [0], [0], [1], [0, 0, 1, 1], [], []>} : vector<16x128xbf16>, vector<128x128xbf16>, vector<16x128xf32> -> vector<16x128xf32>
    %c0_15 = arith.constant 0 : index
    %c0_16 = arith.constant 0 : index
    %19 = vector.load %arg7[%c0_15, %c0_16] : memref<1x128xf32, #tpu.memory_space<vmem>>, vector<1x128xf32>
    %20 = vector.broadcast %19 : vector<1x128xf32> to vector<16x128xf32>
    %21 = arith.addf %18, %20 : vector<16x128xf32>
    %cst_17 = arith.constant 0.000000e+00 : f32
    %22 = vector.broadcast %cst_17 : f32 to vector<16x128xf32>
    %23 = arith.maximumf %21, %22 : vector<16x128xf32>
    %24 = arith.truncf %23 : vector<16x128xf32> to vector<16x128xbf16>
    %c0_18 = arith.constant 0 : index
    %c0_19 = arith.constant 0 : index
    %25 = vector.load %arg8[%c0_18, %c0_19] : memref<128x8xbf16, #tpu.memory_space<vmem>>, vector<128x8xbf16>
    %cst_20 = arith.constant dense<0.000000e+00> : vector<16x8xf32>
    %26 = tpu.matmul %24, %25, %cst_20 {dimension_numbers = #tpu.dot_dimension_numbers<[1], [0], [0], [1], [0, 0, 1, 1], [], []>} : vector<16x128xbf16>, vector<128x8xbf16>, vector<16x8xf32> -> vector<16x8xf32>
    %c0_21 = arith.constant 0 : index
    %c0_22 = arith.constant 0 : index
    %27 = vector.load %arg9[%c0_21, %c0_22] : memref<1x8xf32, #tpu.memory_space<vmem>>, vector<1x8xf32>
    %28 = vector.broadcast %27 : vector<1x8xf32> to vector<16x8xf32>
    %29 = arith.addf %26, %28 : vector<16x8xf32>
    %30 = math.tanh %29 : vector<16x8xf32>
    %c0_23 = arith.constant 0 : index
    %c0_24 = arith.constant 0 : index
    %31 = vector.load %arg10[%c0_23, %c0_24] : memref<16x8xf32, #tpu.memory_space<vmem>>, vector<16x8xf32>
    tpu.vector_store %arg10[%c0_23, %c0_24], %30 {strides = array<i32>} : memref<16x8xf32, #tpu.memory_space<vmem>>, vector<16x8xf32>,
    return
  }
  func.func @transform_0(%arg0: i32) -> (i32, i32) {
    %c0_i32 = arith.constant 0 : i32
    %c0_i32_0 = arith.constant 0 : i32
    return %arg0, %c0_i32 : i32, i32
  }
  func.func @transform_1(%arg0: i32) -> (i32, i32) {
    %c0_i32 = arith.constant 0 : i32
    %c0_i32_0 = arith.constant 0 : i32
    %c0_i32_1 = arith.constant 0 : i32
    return %c0_i32, %c0_i32_0 : i32, i32
  }
  func.func @transform_2(%arg0: i32) -> (i32, i32) {
    %c0_i32 = arith.constant 0 : i32
    %c0_i32_0 = arith.constant 0 : i32
    %c0_i32_1 = arith.constant 0 : i32
    return %c0_i32, %c0_i32_0 : i32, i32
  }
  func.func @transform_3(%arg0: i32) -> (i32, i32) {
    %c0_i32 = arith.constant 0 : i32
    %c0_i32_0 = arith.constant 0 : i32
    %c0_i32_1 = arith.constant 0 : i32
    return %c0_i32, %c0_i32_0 : i32, i32
  }
  func.func @transform_4(%arg0: i32) -> (i32, i32) {
    %c0_i32 = arith.constant 0 : i32
    %c0_i32_0 = arith.constant 0 : i32
    %c0_i32_1 = arith.constant 0 : i32
    return %c0_i32, %c0_i32_0 : i32, i32
  }
  func.func @transform_5(%arg0: i32) -> (i32, i32) {
    %c0_i32 = arith.constant 0 : i32
    %c0_i32_0 = arith.constant 0 : i32
    %c0_i32_1 = arith.constant 0 : i32
    return %c0_i32, %c0_i32_0 : i32, i32
  }
  func.func @transform_6(%arg0: i32) -> (i32, i32) {
    %c0_i32 = arith.constant 0 : i32
    %c0_i32_0 = arith.constant 0 : i32
    %c0_i32_1 = arith.constant 0 : i32
    return %c0_i32, %c0_i32_0 : i32, i32
  }
  func.func @transform_7(%arg0: i32) -> (i32, i32) {
    %c0_i32 = arith.constant 0 : i32
    %c0_i32_0 = arith.constant 0 : i32
    %c0_i32_1 = arith.constant 0 : i32
    return %c0_i32, %c0_i32_0 : i32, i32
  }
  func.func @transform_8(%arg0: i32) -> (i32, i32) {
    %c0_i32 = arith.constant 0 : i32
    %c0_i32_0 = arith.constant 0 : i32
    %c0_i32_1 = arith.constant 0 : i32
    return %c0_i32, %c0_i32_0 : i32, i32
  }
  func.func @transform_9(%arg0: i32) -> (i32, i32) {
    %c0_i32 = arith.constant 0 : i32
    %c0_i32_0 = arith.constant 0 : i32
    return %arg0, %c0_i32 : i32, i32
  }
}

</mosaic_0001>

<bundles_post_ra>
// kernel: tpu_custom_call.1
= control target key start
LH: loop header
LB: loop body
LE: loop exit
PB: predicated region body
PF: predicated region fallthrough
CT: control target
= control target key end

     0   :  { %14 = vsyncpa [#allocation3], 0  ;;  %s876_s0 = inlined_call_operand.vmem [shape: bf16[16,16], index: 0, kind: input, shape index: {}]   ;;  %s877_s1 = inlined_call_operand.hbm [shape: bf16[16,128], index: 1, kind: input, shape index: {}]   ;;  %s878_s2 = inlined_call_operand.vmem [shape: f32[1,128], index: 2, kind: input, shape index: {}]   ;;  %s879_s3 = inlined_call_operand.vmem [shape: bf16[128,128], index: 3, kind: input, shape index: {}]   ;;  %s880_s4 = inlined_call_operand.vmem [shape: f32[1,128], index: 4, kind: input, shape index: {}]   ;;  %s881_s5 = inlined_call_operand.hbm [shape: bf16[128,128], index: 5, kind: input, shape index: {}]   ;;  %s882_s6 = inlined_call_operand.vmem [shape: f32[1,128], index: 6, kind: input, shape index: {}]   ;;  %s883_s7 = inlined_call_operand.vmem [shape: bf16[128,8], index: 7, kind: input, shape index: {}]   ;;  %s884_s8 = inlined_call_operand.vmem [shape: f32[1,8], index: 8, kind: input, shape index: {}]   ;;  %s885_s9 = inlined_call_operand.vmem [shape: f32[16,8], index: 9, kind: output, shape index: {}]  }
   0x1   :  { %15 = vsyncpa [#allocation5], 0  ;;  %s694_s30 = smov [#allocation2]   ;;  %s646_s13 = scalar_lea.hbm %s877_s1, 128 }
   0x2   :  { %s23_s10 = sshll.u32 %s694_s30, 4  ;;  %p647_p0 = scmp.ne.s32.totalorder %s877_s1, %s646_s13  ;;  %s24_s10 = int_to_ptr.vmem [resolvable:$true] %s23_s10 }
   0x3   :  { %p650_p1 = scmp.lt.u32.totalorder %s646_s13, %s877_s1 }
   0x5   :  { %p652_p2 = pnand %p650_p1, %p647_p0 }
   0x7   :  { %655 = shalt.err (!%p652_p2)
}
   0x8   :  { %s656_s18 = scalar_lea.vmem %s24_s10, 128  ;;  %p661_p4 = scmp.lt.s32.totalorder %s24_s10, %s24_s10 }
   0x9   :  { %p657_p3 = scmp.ne.s32.totalorder %s24_s10, %s656_s18  ;;  %p662_p5 = scmp.lt.s32.totalorder %s656_s18, %s656_s18 }
   0xb   :  { %p663_p6 = por %p662_p5, %p661_p4 }
   0xd   :  { %p664_p7 = pnand %p663_p6, %p657_p3 }
   0xf   :  { %667 = shalt.err (!%p664_p7)
}
  0x10   :  { %s695_s19 = smov 64   ;;  %s696_s20 = smov 4  }
  0x11   :  { %29 = dma.hbm_to_vmem [thread:$0]  %s877_s1, 128, %s24_s10, [#allocation3], %s695_s19, %s695_s19, %s696_s20  }
  0x12   :  { %s697_s23 = smov [#allocation4]   ;;  %s668_s27 = scalar_lea.hbm %s881_s5, 1024 }
  0x13   :  { %s41_s24 = sshll.u32 %s697_s23, 4  ;;  %p669_p8 = scmp.ne.s32.totalorder %s881_s5, %s668_s27  ;;  %s42_s24 = int_to_ptr.vmem [resolvable:$true] %s41_s24 }
  0x14   :  { %p672_p9 = scmp.lt.u32.totalorder %s668_s27, %s881_s5 }
  0x16   :  { %p674_p10 = pnand %p672_p9, %p669_p8 }
  0x18   :  { %677 = shalt.err (!%p674_p10)
}
  0x19   :  { %s678_s12 = scalar_lea.vmem %s42_s24, 1024  ;;  %p683_p12 = scmp.lt.s32.totalorder %s42_s24, %s42_s24 }
  0x1a   :  { %p679_p11 = scmp.ne.s32.totalorder %s42_s24, %s678_s12  ;;  %p684_p13 = scmp.lt.s32.totalorder %s678_s12, %s678_s12 }
  0x1c   :  { %p685_p0 = por %p684_p13, %p683_p12 }
  0x1e   :  { %p686_p1 = pnand %p685_p0, %p679_p11 }
  0x20   :  { %689 = shalt.err (!%p686_p1)
}
  0x21   :  { %47 = dma.hbm_to_vmem [thread:$0]  %s881_s5, 1024, %s42_s24, [#allocation5], %s695_s19, %s695_s19, %s696_s20  }
  0x22   :  { %690 = dma.done.wait [#allocation3], 128  }
  0x23   :  { %691 = vsyncadd [#allocation3], 4294967168 }
  0x24   :  { %692 = dma.done.wait [#allocation5], 1024  }
  0x25   :  { %693 = vsyncadd [#allocation5], 4294966272  ;;  %v698_v0 = vmov 0.0   ;;  %vm699_vm0 = vmmov 0   ;;  %v616_v1 = vld [vmem:[#allocation2] sm:$0xff]   ;;  %vm83_vm1 = vcmask 130048  }
  0x26   :  { %544 = vmatprep.subr.bf16.mxu0 %v698_v0  ;;  %546 = vmatprep.mubr.msk.bf16.mxu0 %vm699_vm0, %v698_v0  ;;  %v617_v2 = vld [vmem:[%s876_s0] sm:$0xff]   ;;  %v619_v4 = vld [vmem:[%s879_s3 + $0x8] sm:$0xff]   ;;  %v620_v5 = vld [vmem:[%s879_s3 + $0x10] sm:$0xff]   ;;  %vm475_vm2 = vcmask 64512  }
  0x27   :  { %550 = vmatprep.subr.bf16.mxu1 %v698_v0  ;;  %566 = vmatprep.mubr.msk.bf16.mxu1 %vm699_vm0, %v698_v0  ;;  %v618_v3 = vld [vmem:[%s879_s3] sm:$0xff]   ;;  %v621_v6 = vld [vmem:[%s879_s3 + $0x18] sm:$0xff]   ;;  %v623_v8 = vld [vmem:[%s879_s3 + $0x28] sm:$0xff]  }
  0x28   :  { %545 = vmatpush3.bf16.msra.mxu0 %v616_v1  ;;  %551 = vmatpush3.bf16.msra.mxu1 %v618_v3  ;;  %v622_v7 = vld [vmem:[%s879_s3 + $0x20] sm:$0xff]   ;;  %v624_v9 = vld [vmem:[%s879_s3 + $0x30] sm:$0xff]   ;;  %v625_v10 = vld [vmem:[%s879_s3 + $0x38] sm:$0xff]  }
  0x29   :  { %570 = vmatprep.subr.bf16.mxu0 %v698_v0  ;;  %552 = vmatprep.subr.bf16.mxu1 %v698_v0  ;;  %v626_v11 = vld [vmem:[#allocation4] sm:$0xff]   ;;  %v627_v12 = vld [vmem:[#allocation4 + $0x8] sm:$0xff]   ;;  %v628_v13 = vld [vmem:[#allocation4 + $0x10] sm:$0xff]  }
  0x2a   :  { %v629_v14 = vld [vmem:[#allocation4 + $0x18] sm:$0xff]   ;;  %v630_v15 = vld [vmem:[#allocation4 + $0x20] sm:$0xff]   ;;  %v631_v16 = vld [vmem:[#allocation4 + $0x28] sm:$0xff]  }
  0x2b   :  { %547 = vmatmul.mubr.msk.bf16.vlgmr.msra.gmra.mrb[0].mxu0 %vm83_vm1, %v617_v2  ;;  %v484_v17 = vld [vmem:[%s878_s2] ss:$0 sm:$0xff]  ;;  %v632_v27 = vld [vmem:[#allocation4 + $0x30] sm:$0xff]   ;;  %v635_v30 = vld [vmem:[%s883_s7 + $0x8] sm:$0xff]  }
  0x2c   :  { %586 = vmatprep.mubr.msk.bf16.mxu0 %vm699_vm0, %v698_v0  ;;  %553 = vmatpush3.bf16.msra.mxu1 %v619_v4  ;;  %v633_v28 = vld [vmem:[#allocation4 + $0x38] sm:$0xff]   ;;  %v636_v31 = vld [vmem:[%s883_s7 + $0x10] sm:$0xff]   ;;  %v637_v32 = vld [vmem:[%s883_s7 + $0x18] sm:$0xff]  }
  0x2d   :  { %554 = vmatprep.subr.bf16.mxu1 %v698_v0  ;;  %571 = vmatpush3.bf16.msra.mxu0 %v626_v11  ;;  %v634_v29 = vld [vmem:[%s883_s7] sm:$0xff]   ;;  %v639_v34 = vld [vmem:[%s883_s7 + $0x28] sm:$0xff]   ;;  %v640_v45 = vld [vmem:[%s883_s7 + $0x30] sm:$0xff]  }
  0x2e   :  { %572 = vmatprep.subr.bf16.mxu0 %v698_v0  ;;  %v638_v33 = vld [vmem:[%s883_s7 + $0x20] sm:$0xff]   ;;  %v641_v46 = vld [vmem:[%s883_s7 + $0x38] sm:$0xff]  }
  0x2f   :  { %v488_v35 = vld [vmem:[%s880_s4] ss:$0 sm:$0xff] }
  0x30   :  { %555 = vmatpush3.bf16.msra.mxu1 %v620_v5  ;;  %v497_v47 = vld [vmem:[%s882_s6] ss:$0 sm:$0xff] }
  0x31   :  { %556 = vmatprep.subr.bf16.mxu1 %v698_v0  ;;  %573 = vmatpush3.bf16.msra.mxu0 %v627_v12  ;;  %v506_v57 = vld [vmem:[%s884_s8] ss:$0 sm:$0xff] }
  0x32   :  { %574 = vmatprep.subr.bf16.mxu0 %v698_v0 }
  0x34   :  { %557 = vmatpush3.bf16.msra.mxu1 %v621_v6 }
  0x35   :  { %558 = vmatprep.subr.bf16.mxu1 %v698_v0  ;;  %575 = vmatpush3.bf16.msra.mxu0 %v628_v13 }
  0x36   :  { %576 = vmatprep.subr.bf16.mxu0 %v698_v0 }
  0x38   :  { %559 = vmatpush3.bf16.msra.mxu1 %v622_v7 }
  0x39   :  { %560 = vmatprep.subr.bf16.mxu1 %v698_v0  ;;  %577 = vmatpush3.bf16.msra.mxu0 %v629_v14 }
  0x3a   :  { %578 = vmatprep.subr.bf16.mxu0 %v698_v0 }
  0x3c   :  { %561 = vmatpush3.bf16.msra.mxu1 %v623_v8 }
  0x3d   :  { %562 = vmatprep.subr.bf16.mxu1 %v698_v0  ;;  %579 = vmatpush3.bf16.msra.mxu0 %v630_v15 }
  0x3e   :  { %580 = vmatprep.subr.bf16.mxu0 %v698_v0 }
  0x40   :  { %563 = vmatpush3.bf16.msra.mxu1 %v624_v9 }
  0x41   :  { %564 = vmatprep.subr.bf16.mxu1 %v698_v0  ;;  %581 = vmatpush3.bf16.msra.mxu0 %v631_v16 }
  0x42   :  { %582 = vmatprep.subr.bf16.mxu0 %v698_v0 }
  0x44   :  { %565 = vmatpush3.bf16.msra.mxu1 %v625_v10 }
  0x45   :  { %590 = vmatprep.subr.bf16.mxu1 %v698_v0  ;;  %583 = vmatpush3.bf16.msra.mxu0 %v632_v27 }
  0x46   :  { %584 = vmatprep.subr.bf16.mxu0 %v698_v0 }
  0x49   :  { %585 = vmatpush3.bf16.msra.mxu0 %v633_v28 }
  0xfe   :  { %v121_v18 = vpop.f32.mrb[0].mxu0 }
  0xff   :  { %v122_v19 = vadd.f32 %v484_v17, %v121_v18  ;;  %v548_v20 = vpop.f32.mrb[1].mxu0 }
 0x100   :  { %v124_v21 = vpop.f32.mrb[2].mxu0 }
 0x101   :  { %v125_v22 = vadd.f32 %v484_v17, %v124_v21  ;;  %v549_v23 = vpop.f32.mrb[3].mxu0  ;;  %v128_v24 = vmax.f32 %v122_v19, 0.0 }
 0x103   :  { %v129_v25 = vmax.f32 %v125_v22, 0.0 }
 0x105   :  { %v130_v26 = vpack.c.bf16 %v129_v25, %v128_v24 }
 0x107   :  { %567 = vmatmul.mubr.bf16.vlgmr.msra.gmra.mrb[0].mxu1 %v130_v26 }
 0x108   :  { %606 = vmatprep.mubr.msk.bf16.mxu1 %vm699_vm0, %v698_v0  ;;  %591 = vmatpush3.bf16.msra.mxu1 %v634_v29 }
 0x109   :  { %592 = vmatprep.subr.bf16.mxu1 %v698_v0 }
 0x10c   :  { %593 = vmatpush3.bf16.msra.mxu1 %v635_v30 }
 0x10d   :  { %594 = vmatprep.subr.bf16.mxu1 %v698_v0 }
 0x110   :  { %595 = vmatpush3.bf16.msra.mxu1 %v636_v31 }
 0x111   :  { %596 = vmatprep.subr.bf16.mxu1 %v698_v0 }
 0x114   :  { %597 = vmatpush3.bf16.msra.mxu1 %v637_v32 }
 0x115   :  { %598 = vmatprep.subr.bf16.mxu1 %v698_v0 }
 0x118   :  { %599 = vmatpush3.bf16.msra.mxu1 %v638_v33 }
 0x119   :  { %600 = vmatprep.subr.bf16.mxu1 %v698_v0 }
 0x11c   :  { %601 = vmatpush3.bf16.msra.mxu1 %v639_v34 }
 0x11d   :  { %602 = vmatprep.subr.bf16.mxu1 %v698_v0 }
 0x120   :  { %603 = vmatpush3.bf16.msra.mxu1 %v640_v45 }
 0x121   :  { %604 = vmatprep.subr.bf16.mxu1 %v698_v0 }
 0x124   :  { %605 = vmatpush3.bf16.msra.mxu1 %v641_v46 }
 0x1da   :  { %v236_v36 = vpop.f32.mrb[0].mxu1 }
 0x1db   :  { %v237_v37 = vadd.f32 %v488_v35, %v236_v36  ;;  %v568_v38 = vpop.f32.mrb[1].mxu1 }
 0x1dc   :  { %v239_v39 = vpop.f32.mrb[2].mxu1 }
 0x1dd   :  { %v240_v40 = vadd.f32 %v488_v35, %v239_v39  ;;  %v569_v41 = vpop.f32.mrb[3].mxu1  ;;  %v243_v42 = vmax.f32 %v237_v37, 0.0 }
 0x1df   :  { %v244_v43 = vmax.f32 %v240_v40, 0.0 }
 0x1e1   :  { %v245_v44 = vpack.c.bf16 %v244_v43, %v243_v42 }
 0x1e3   :  { %587 = vmatmul.mubr.bf16.vlgmr.msra.gmra.mrb[4].mxu0 %v245_v44 }
 0x2b6   :  { %v351_v48 = vpop.f32.mrb[4].mxu0 }
 0x2b7   :  { %v352_v49 = vadd.f32 %v497_v47, %v351_v48  ;;  %v588_v50 = vpop.f32.mrb[5].mxu0 }
 0x2b8   :  { %v354_v51 = vpop.f32.mrb[6].mxu0 }
 0x2b9   :  { %v355_v52 = vadd.f32 %v497_v47, %v354_v51  ;;  %v589_v53 = vpop.f32.mrb[7].mxu0  ;;  %v358_v54 = vmax.f32 %v352_v49, 0.0 }
 0x2bb   :  { %v359_v55 = vmax.f32 %v355_v52, 0.0 }
 0x2bd   :  { %v360_v56 = vpack.c.bf16 %v359_v55, %v358_v54 }
 0x2bf   :  { %607 = vmatmul.mubr.bf16.vlgmr.msra.gmra.mrb[4].mxu1 %v360_v56 }
 0x392   :  { %v466_v58 = vpop.f32.mrb[4].mxu1 }
 0x393   :  { %v467_v59 = vadd.f32 %v506_v57, %v466_v58  ;;  %v608_v60 = vpop.f32.mrb[5].mxu1 }
 0x394   :  { %v469_v61 = vpop.f32.mrb[6].mxu1 }
 0x395   :  { %642 = vtanh.f32 %v467_v59  ;;  %v470_v62 = vadd.f32 %v506_v57, %v469_v61  ;;  %v609_v63 = vpop.f32.mrb[7].mxu1 }
 0x397   :  { %644 = vtanh.f32 %v470_v62 }
 0x39f   :  { %v643_v0 = vpop.eup %642 }
 0x3a0   :  { %476 = vst.msk [vmem:[%s885_s9] sm:$0xff] %vm475_vm2, %v643_v0 }
 0x3a1   :  { %v645_v1 = vpop.eup %644 }
 0x3a2   :  { %477 = vst.msk [vmem:[%s885_s9 + $0x8] sm:$0xff] %vm475_vm2, %v645_v1 }
 0x3a3   :  { %482 = vsyncpa [#allocation3], 1 }
 0x3a4   :  { %483 = vsyncpa [#allocation5], 1 }

</bundles_post_ra>
